<compile_context>
chip_gen: v7x
topology: tpu7x:2x2x1
jax: 0.10.0
libtpu: 0.0.40
codegen_flags: <defaults>
</compile_context>

<pallas_src>
import jax
import jax.numpy as jnp
from jax.experimental import pallas as pl
from jax.experimental.pallas import tpu as pltpu

EPS = 1e-5


def _conv_bn_relu_kernel(x_ref, w_ref, g_ref, b_ref, o_ref):
    # 1x1 conv == plain MXU matmul: (M, Cin) @ (Cin, Cout) -> (M, Cout),
    # bf16 operands, f32 accumulation. Output is lane-dense (Cout=128 lanes).
    y = jnp.dot(x_ref[...], w_ref[...], preferred_element_type=jnp.float32)

    # Training-mode BatchNorm statistics per output channel, single pass:
    # mean = E[y], var = E[y^2] - mean^2 (biased), reduced over M = N*H*W.
    m = y.shape[0]
    inv_m = 1.0 / m
    mean = jnp.sum(y, axis=0, keepdims=True) * inv_m           # (1, Cout)
    mean_sq = jnp.sum(y * y, axis=0, keepdims=True) * inv_m    # (1, Cout)
    var = mean_sq - mean * mean
    inv = jax.lax.rsqrt(var + EPS)

    # Fold the BN affine into one per-channel scale/shift (row vregs).
    scale = inv * g_ref[...]                                   # (1, Cout)
    shift = b_ref[...] - mean * scale                          # (1, Cout)

    # FMA-style epilogue + ReLU, stored lane-dense.
    o_ref[...] = jnp.maximum(y * scale + shift, 0.0)


def conv_bn_relu(x_nchw, w_oi11, gamma, beta):
    """x_nchw: (N, Cin, H, W) f32; w_oi11: (Cout, Cin, 1, 1) f32; gamma/beta: (Cout,)."""
    n, cin, h, w = x_nchw.shape
    cout = w_oi11.shape[0]
    m = n * h * w

    # Layout plumbing in the wrapper so the kernel's GEMM output is lane-dense:
    # NCHW -> (M, Cin) channel-last activations, (Cin, Cout) weights.
    x_mc = jnp.transpose(x_nchw, (0, 2, 3, 1)).reshape(m, cin).astype(jnp.bfloat16)
    w_ck = jnp.transpose(w_oi11.reshape(cout, cin), (1, 0)).astype(jnp.bfloat16)
    g = gamma.reshape(1, cout).astype(jnp.float32)
    b = beta.reshape(1, cout).astype(jnp.float32)

    cost = pl.CostEstimate(
        flops=2 * m * cin * cout,
        transcendentals=cout,  # rsqrt per channel
        bytes_accessed=2 * (m * cin + cin * cout) + 4 * (m * cout + 2 * cout),
    )

    out_mc = pl.pallas_call(
        _conv_bn_relu_kernel,
        out_shape=jax.ShapeDtypeStruct((m, cout), jnp.float32),
        grid=(1,),
        in_specs=[
            pl.BlockSpec((m, cin), lambda i: (0, 0)),       # x   (49, 896)  lanes=896
            pl.BlockSpec((cin, cout), lambda i: (0, 0)),    # w   (896, 128) lanes=128
            pl.BlockSpec((1, cout), lambda i: (0, 0)),      # gamma (1, 128)
            pl.BlockSpec((1, cout), lambda i: (0, 0)),      # beta  (1, 128)
        ],
        out_specs=pl.BlockSpec((m, cout), lambda i: (0, 0)),  # y (49, 128) lane-dense
        compiler_params=pltpu.CompilerParams(
            dimension_semantics=("arbitrary",),
        ),
        cost_estimate=cost,
    )(x_mc, w_ck, g, b)

    # (M, Cout) -> (N, Cout, H, W).
    return out_mc.reshape(n, h, w, cout).transpose(0, 3, 1, 2)


if __name__ == "__main__":
    key = jax.random.PRNGKey(0)
    k_x, k_w = jax.random.split(key)

    # Shapes implied by the module: input (1, 896, 7, 7), conv 896 -> 128, 1x1.
    N, CIN, H, W = 1, 896, 7, 7
    COUT = 128

    x = jax.random.normal(k_x, (N, CIN, H, W), dtype=jnp.float32)
    # Deterministic conv weight (Kaiming-like scale for a 1x1 conv).
    w_conv = jax.random.normal(k_w, (COUT, CIN, 1, 1), dtype=jnp.float32) * (1.0 / jnp.sqrt(CIN))
    gamma = jnp.ones((COUT,), dtype=jnp.float32)   # BatchNorm2d default weight init
    beta = jnp.zeros((COUT,), dtype=jnp.float32)   # BatchNorm2d default bias init

    out = conv_bn_relu(x, w_conv, gamma, beta)
    jax.block_until_ready(out)
    assert out.shape == (N, COUT, H, W), out.shape

    def bn_relu_ref(y):
        mu = jnp.mean(y, axis=(0, 2, 3), keepdims=True)
        var = jnp.mean((y - mu) ** 2, axis=(0, 2, 3), keepdims=True)
        return jnp.maximum(
            (y - mu) * jax.lax.rsqrt(var + EPS)
            * gamma.reshape(1, COUT, 1, 1) + beta.reshape(1, COUT, 1, 1),
            0.0,
        )

    # Tight check: reference using the same bf16 input quantization as the kernel.
    xq = x.astype(jnp.bfloat16).astype(jnp.float32)
    wq = w_conv.astype(jnp.bfloat16).astype(jnp.float32)
    ref_q = bn_relu_ref(jnp.einsum("oc,nchw->nohw", wq.reshape(COUT, CIN), xq))
    err_q = float(jnp.max(jnp.abs(out - ref_q)))
    assert jnp.allclose(out, ref_q, atol=1e-3, rtol=1e-3), err_q

    # Loose sanity check against the full-f32 module semantics (bf16 operand
    # rounding is mostly absorbed by the BN re-normalization).
    ref_f = bn_relu_ref(jnp.einsum("oc,nchw->nohw", w_conv.reshape(COUT, CIN), x))
    err_f = float(jnp.max(jnp.abs(out - ref_f)))
    assert jnp.allclose(out, ref_f, atol=5e-2, rtol=5e-2), err_f

    print("KERNEL_OK")
</pallas_src>

<mosaic_0001>
module attributes {stable_mosaic.version = 11 : i64} {
  func.func @_conv_bn_relu_kernel(%arg0: i32, %arg1: memref<49x896xbf16, #tpu.memory_space<vmem>>, %arg2: memref<896x128xbf16, #tpu.memory_space<vmem>>, %arg3: memref<1x128xf32, #tpu.memory_space<vmem>>, %arg4: memref<1x128xf32, #tpu.memory_space<vmem>>, %arg5: memref<49x128xf32, #tpu.memory_space<vmem>>) attributes {dimension_semantics = [#tpu.dimension_semantics<arbitrary>], iteration_bounds = array<i64: 1>, scalar_prefetch = 0 : i64, scratch_operands = 0 : i64, tpu.core_type = #tpu.core_type<tc>, window_params = [{pipeline_mode = #tpu.pipeline_mode<synchronous>, transform_indices = @transform_0, window_bounds = array<i64: 49, 896>}, {pipeline_mode = #tpu.pipeline_mode<synchronous>, transform_indices = @transform_1, window_bounds = array<i64: 896, 128>}, {pipeline_mode = #tpu.pipeline_mode<synchronous>, transform_indices = @transform_2, window_bounds = array<i64: 1, 128>}, {pipeline_mode = #tpu.pipeline_mode<synchronous>, transform_indices = @transform_3, window_bounds = array<i64: 1, 128>}, {pipeline_mode = #tpu.pipeline_mode<synchronous>, transform_indices = @transform_4, window_bounds = array<i64: 49, 128>}]} {
    %c0 = arith.constant 0 : index
    %c0_0 = arith.constant 0 : index
    %0 = vector.load %arg1[%c0, %c0_0] : memref<49x896xbf16, #tpu.memory_space<vmem>>, vector<49x896xbf16>
    %c0_1 = arith.constant 0 : index
    %c0_2 = arith.constant 0 : index
    %1 = vector.load %arg2[%c0_1, %c0_2] : memref<896x128xbf16, #tpu.memory_space<vmem>>, vector<896x128xbf16>
    %cst = arith.constant dense<0.000000e+00> : vector<49x128xf32>
    %2 = tpu.matmul %0, %1, %cst {dimension_numbers = #tpu.dot_dimension_numbers<[1], [0], [0], [1], [0, 0, 1, 1], [], []>} : vector<49x896xbf16>, vector<896x128xbf16>, vector<49x128xf32> -> vector<49x128xf32>
    %cst_3 = arith.constant dense<0.000000e+00> : vector<128xf32>
    %3 = vector.multi_reduction <add>, %2, %cst_3 [0] : vector<49x128xf32> to vector<128xf32>
    %4 = vector.shape_cast %3 : vector<128xf32> to vector<1x128xf32>
    %cst_4 = arith.constant 0.0204081628 : f32
    %5 = vector.broadcast %cst_4 : f32 to vector<1x128xf32>
    %6 = arith.mulf %4, %5 : vector<1x128xf32>
    %7 = arith.mulf %2, %2 : vector<49x128xf32>
    %cst_5 = arith.constant dense<0.000000e+00> : vector<128xf32>
    %8 = vector.multi_reduction <add>, %7, %cst_5 [0] : vector<49x128xf32> to vector<128xf32>
    %9 = vector.shape_cast %8 : vector<128xf32> to vector<1x128xf32>
    %cst_6 = arith.constant 0.0204081628 : f32
    %10 = vector.broadcast %cst_6 : f32 to vector<1x128xf32>
    %11 = arith.mulf %9, %10 : vector<1x128xf32>
    %12 = arith.mulf %6, %6 : vector<1x128xf32>
    %13 = arith.subf %11, %12 : vector<1x128xf32>
    %cst_7 = arith.constant 9.99999974E-6 : f32
    %14 = vector.broadcast %cst_7 : f32 to vector<1x128xf32>
    %15 = arith.addf %13, %14 : vector<1x128xf32>
    %16 = math.rsqrt %15 : vector<1x128xf32>
    %c0_8 = arith.constant 0 : index
    %c0_9 = arith.constant 0 : index
    %17 = vector.load %arg3[%c0_8, %c0_9] : memref<1x128xf32, #tpu.memory_space<vmem>>, vector<1x128xf32>
    %18 = arith.mulf %16, %17 : vector<1x128xf32>
    %c0_10 = arith.constant 0 : index
    %c0_11 = arith.constant 0 : index
    %19 = vector.load %arg4[%c0_10, %c0_11] : memref<1x128xf32, #tpu.memory_space<vmem>>, vector<1x128xf32>
    %20 = arith.mulf %6, %18 : vector<1x128xf32>
    %21 = arith.subf %19, %20 : vector<1x128xf32>
    %22 = vector.broadcast %18 : vector<1x128xf32> to vector<49x128xf32>
    %23 = arith.mulf %2, %22 : vector<49x128xf32>
    %24 = vector.broadcast %21 : vector<1x128xf32> to vector<49x128xf32>
    %25 = arith.addf %23, %24 : vector<49x128xf32>
    %cst_12 = arith.constant 0.000000e+00 : f32
    %26 = vector.broadcast %cst_12 : f32 to vector<49x128xf32>
    %27 = arith.maximumf %25, %26 : vector<49x128xf32>
    %c0_13 = arith.constant 0 : index
    %c0_14 = arith.constant 0 : index
    %28 = vector.load %arg5[%c0_13, %c0_14] : memref<49x128xf32, #tpu.memory_space<vmem>>, vector<49x128xf32>
    tpu.vector_store %arg5[%c0_13, %c0_14], %27 {strides = array<i32>} : memref<49x128xf32, #tpu.memory_space<vmem>>, vector<49x128xf32>,
    return
  }
  func.func @transform_0(%arg0: i32) -> (i32, i32) {
    %c0_i32 = arith.constant 0 : i32
    %c0_i32_0 = arith.constant 0 : i32
    %c0_i32_1 = arith.constant 0 : i32
    return %c0_i32, %c0_i32_0 : i32, i32
  }
  func.func @transform_1(%arg0: i32) -> (i32, i32) {
    %c0_i32 = arith.constant 0 : i32
    %c0_i32_0 = arith.constant 0 : i32
    %c0_i32_1 = arith.constant 0 : i32
    return %c0_i32, %c0_i32_0 : i32, i32
  }
  func.func @transform_2(%arg0: i32) -> (i32, i32) {
    %c0_i32 = arith.constant 0 : i32
    %c0_i32_0 = arith.constant 0 : i32
    %c0_i32_1 = arith.constant 0 : i32
    return %c0_i32, %c0_i32_0 : i32, i32
  }
  func.func @transform_3(%arg0: i32) -> (i32, i32) {
    %c0_i32 = arith.constant 0 : i32
    %c0_i32_0 = arith.constant 0 : i32
    %c0_i32_1 = arith.constant 0 : i32
    return %c0_i32, %c0_i32_0 : i32, i32
  }
  func.func @transform_4(%arg0: i32) -> (i32, i32) {
    %c0_i32 = arith.constant 0 : i32
    %c0_i32_0 = arith.constant 0 : i32
    %c0_i32_1 = arith.constant 0 : i32
    return %c0_i32, %c0_i32_0 : i32, i32
  }
}

</mosaic_0001>

<bundles_post_ra>
// kernel: tpu_custom_call.1
= control target key start
LH: loop header
LB: loop body
LE: loop exit
PB: predicated region body
PF: predicated region fallthrough
CT: control target
= control target key end

     0   :  { %9 = vsyncpa [#allocation3], 0  ;;  %s1529_s0 = inlined_call_operand.hbm [shape: bf16[49,896], index: 0, kind: input, shape index: {}]   ;;  %s1530_s1 = inlined_call_operand.hbm [shape: bf16[896,128], index: 1, kind: input, shape index: {}]   ;;  %s1531_s2 = inlined_call_operand.vmem [shape: f32[1,128], index: 2, kind: input, shape index: {}]   ;;  %s1532_s3 = inlined_call_operand.vmem [shape: f32[1,128], index: 3, kind: input, shape index: {}]   ;;  %s1533_s4 = inlined_call_operand.hbm [shape: f32[49,128], index: 4, kind: output, shape index: {}]  }
   0x1   :  { %10 = vsyncpa [#allocation6], 0 }
   0x2   :  { %11 = vsyncpa [#allocation4], 0  ;;  %s1429_s15 = smov [#allocation2]   ;;  %s1357_s19 = scalar_lea.hbm %s1529_s0, 3136 }
   0x3   :  { %s17_s16 = sshll.u32 %s1429_s15, 4  ;;  %p1358_p0 = scmp.ne.s32.totalorder %s1529_s0, %s1357_s19  ;;  %s18_s16 = int_to_ptr.vmem [resolvable:$true] %s17_s16 }
   0x4   :  { %p1361_p1 = scmp.lt.u32.totalorder %s1357_s19, %s1529_s0 }
   0x6   :  { %p1363_p2 = pnand %p1361_p1, %p1358_p0 }
   0x8   :  { %1366 = shalt.err (!%p1363_p2)
}
   0x9   :  { %s1367_s24 = scalar_lea.vmem %s18_s16, 3136  ;;  %p1372_p4 = scmp.lt.s32.totalorder %s18_s16, %s18_s16 }
   0xa   :  { %p1368_p3 = scmp.ne.s32.totalorder %s18_s16, %s1367_s24  ;;  %p1373_p5 = scmp.lt.s32.totalorder %s1367_s24, %s1367_s24 }
   0xc   :  { %p1374_p6 = por %p1373_p5, %p1372_p4 }
   0xe   :  { %p1375_p7 = pnand %p1374_p6, %p1368_p3 }
  0x10   :  { %1378 = shalt.err (!%p1375_p7)
}
  0x11   :  { %s1430_s25 = smov 448   ;;  %s1431_s26 = smov 28  }
  0x12   :  { %23 = dma.hbm_to_vmem [thread:$0]  %s1529_s0, 3136, %s18_s16, [#allocation3], %s1430_s25, %s1430_s25, %s1431_s26  }
  0x13   :  { %s1432_s29 = smov [#allocation5]   ;;  %s1379_s7 = scalar_lea.hbm %s1530_s1, 7168 }
  0x14   :  { %s29_s30 = sshll.u32 %s1432_s29, 4  ;;  %p1380_p8 = scmp.ne.s32.totalorder %s1530_s1, %s1379_s7  ;;  %s30_s30 = int_to_ptr.vmem [resolvable:$true] %s29_s30 }
  0x15   :  { %p1383_p9 = scmp.lt.u32.totalorder %s1379_s7, %s1530_s1 }
  0x17   :  { %p1385_p10 = pnand %p1383_p9, %p1380_p8 }
  0x19   :  { %1388 = shalt.err (!%p1385_p10)
}
  0x1a   :  { %s1389_s12 = scalar_lea.vmem %s30_s30, 7168  ;;  %p1394_p12 = scmp.lt.s32.totalorder %s30_s30, %s30_s30 }
  0x1b   :  { %p1390_p11 = scmp.ne.s32.totalorder %s30_s30, %s1389_s12  ;;  %p1395_p13 = scmp.lt.s32.totalorder %s1389_s12, %s1389_s12 }
  0x1d   :  { %p1396_p0 = por %p1395_p13, %p1394_p12 }
  0x1f   :  { %p1397_p1 = pnand %p1396_p0, %p1390_p11 }
  0x21   :  { %1400 = shalt.err (!%p1397_p1)
}
  0x22   :  { %s1433_s0 = smov 64   ;;  %s1434_s13 = smov 4  }
  0x23   :  { %35 = dma.hbm_to_vmem [thread:$0]  %s1530_s1, 7168, %s30_s30, [#allocation6], %s1433_s0, %s1433_s0, %s1434_s13  }
  0x24   :  { %1423 = dma.done.wait [#allocation3], 3136  }
  0x25   :  { %1424 = vsyncadd [#allocation3], 4294964160 }
  0x26   :  { %1425 = dma.done.wait [#allocation6], 7168  }
  0x27   :  { %1426 = vsyncadd [#allocation6], 4294960128  ;;  %v1262_v0 = vld [vmem:[#allocation5 + $0x40] sm:$0xff]   ;;  %v1266_v4 = vld [vmem:[#allocation5 + $0x48] sm:$0xff]   ;;  %vm917_vm0 = vcmask 1040384  }
  0x28   :  { %v1263_v1 = vld [vmem:[#allocation5 + $0xc0] sm:$0xff]   ;;  %1097 = vmatprep.subr.bf16.mxu0 %v1262_v0  ;;  %v1267_v5 = vld [vmem:[#allocation5 + $0xc8] sm:$0xff]   ;;  %v1270_v8 = vld [vmem:[#allocation5 + $0x50] sm:$0xff]  }
  0x29   :  { %v1264_v2 = vld [vmem:[#allocation5] sm:$0xff]   ;;  %1137 = vmatprep.subr.bf16.mxu1 %v1263_v1  ;;  %v1268_v6 = vld [vmem:[#allocation5 + $0x8] sm:$0xff]   ;;  %v1271_v9 = vld [vmem:[#allocation5 + $0xd0] sm:$0xff]  }
  0x2a   :  { %v1265_v3 = vld [vmem:[#allocation5 + $0x80] sm:$0xff]   ;;  %1098 = vmatpush3.bf16.msra.mxu0 %v1264_v2  ;;  %v1269_v7 = vld [vmem:[#allocation5 + $0x88] sm:$0xff]   ;;  %v1272_v10 = vld [vmem:[#allocation5 + $0x10] sm:$0xff]  }
  0x2b   :  { %1138 = vmatpush3.bf16.msra.mxu1 %v1265_v3  ;;  %1099 = vmatprep.subr.bf16.mxu0 %v1266_v4  ;;  %v1273_v11 = vld [vmem:[#allocation5 + $0x90] sm:$0xff]   ;;  %v1274_v12 = vld [vmem:[#allocation5 + $0x58] sm:$0xff]   ;;  %v1278_v16 = vld [vmem:[#allocation5 + $0x60] sm:$0xff]  }
  0x2c   :  { %1139 = vmatprep.subr.bf16.mxu1 %v1267_v5  ;;  %v1275_v13 = vld [vmem:[#allocation5 + $0xd8] sm:$0xff]   ;;  %v1279_v17 = vld [vmem:[#allocation5 + $0xe0] sm:$0xff]   ;;  %v1282_v20 = vld [vmem:[#allocation5 + $0x68] sm:$0xff]  }
  0x2d   :  { %v1276_v14 = vld [vmem:[#allocation5 + $0x18] sm:$0xff]   ;;  %v1280_v18 = vld [vmem:[#allocation5 + $0x20] sm:$0xff]   ;;  %v1283_v21 = vld [vmem:[#allocation5 + $0xe8] sm:$0xff]  }
  0x2e   :  { %1100 = vmatpush3.bf16.msra.mxu0 %v1268_v6  ;;  %v1277_v15 = vld [vmem:[#allocation5 + $0x98] sm:$0xff]   ;;  %v1281_v19 = vld [vmem:[#allocation5 + $0xa0] sm:$0xff]   ;;  %v1284_v22 = vld [vmem:[#allocation5 + $0x28] sm:$0xff]  }
  0x2f   :  { %1140 = vmatpush3.bf16.msra.mxu1 %v1269_v7  ;;  %1101 = vmatprep.subr.bf16.mxu0 %v1270_v8  ;;  %v1285_v23 = vld [vmem:[#allocation5 + $0xa8] sm:$0xff]   ;;  %v1286_v24 = vld [vmem:[#allocation5 + $0x70] sm:$0xff]   ;;  %v1290_v28 = vld [vmem:[#allocation5 + $0x78] sm:$0xff]  }
  0x30   :  { %1141 = vmatprep.subr.bf16.mxu1 %v1271_v9  ;;  %v1287_v25 = vld [vmem:[#allocation5 + $0xf0] sm:$0xff]   ;;  %v1291_v29 = vld [vmem:[#allocation5 + $0xf8] sm:$0xff]   ;;  %v1297_v34 = vld [vmem:[#allocation2 + $0x8] ss:$28 sps:$4 sm:$0xff]  }
  0x31   :  { %v1288_v26 = vld [vmem:[#allocation5 + $0x30] sm:$0xff]   ;;  %v1292_v30 = vld [vmem:[#allocation5 + $0x38] sm:$0xff]   ;;  %v1299_v35 = vld [vmem:[#allocation2 + $0xc] ss:$28 sps:$4 sm:$0xff]  }
  0x32   :  { %1102 = vmatpush3.bf16.msra.mxu0 %v1272_v10  ;;  %v1289_v27 = vld [vmem:[#allocation5 + $0xb0] sm:$0xff]   ;;  %v1293_v31 = vld [vmem:[#allocation5 + $0xb8] sm:$0xff]   ;;  %v1300_v36 = vld [vmem:[#allocation5 + $0x140] sm:$0xff]   ;;  %752 = vmatprep.mubr.bf16.mxu1 %v1299_v35 }
  0x33   :  { %1142 = vmatpush3.bf16.msra.mxu1 %v1273_v11  ;;  %1103 = vmatprep.subr.bf16.mxu0 %v1274_v12  ;;  %v1294_v32 = vld [vmem:[#allocation2] ss:$28 sps:$4 sm:$0xff]   ;;  %v1301_v37 = vld [vmem:[#allocation5 + $0x100] sm:$0xff]   ;;  %v1302_v38 = vld [vmem:[#allocation5 + $0x148] sm:$0xff]  }
  0x34   :  { %1143 = vmatprep.subr.bf16.mxu1 %v1275_v13  ;;  %v1296_v33 = vld [vmem:[#allocation2 + $0x4] ss:$28 sps:$4 sm:$0xff]   ;;  %v1304_v40 = vld [vmem:[#allocation5 + $0x108] sm:$0xff]   ;;  %v1305_v41 = vld [vmem:[#allocation2 + $0x3c] ss:$28 sps:$4 sm:$0xff]  }
  0x35   :  { %688 = vmatprep.mubr.bf16.mxu0 %v1296_v33  ;;  %v1303_v39 = vld [vmem:[#allocation5 + $0x180] sm:$0xff]   ;;  %v1309_v43 = vld [vmem:[#allocation2 + $0x38] ss:$28 sps:$4 sm:$0xff]   ;;  %v1310_v44 = vld [vmem:[#allocation2 + $0x40] ss:$28 sps:$4 sm:$0xff]  }
  0x36   :  { %1104 = vmatpush3.bf16.msra.mxu0 %v1276_v14  ;;  %v1307_v42 = vld [vmem:[#allocation2 + $0x44] ss:$28 sps:$4 sm:$0xff]   ;;  %v1311_v45 = vld [vmem:[#allocation5 + $0x150] sm:$0xff]   ;;  %v1312_v46 = vld [vmem:[#allocation5 + $0x188] sm:$0xff]  }
  0x37   :  { %1144 = vmatpush3.bf16.msra.mxu1 %v1277_v15  ;;  %1105 = vmatprep.subr.bf16.mxu0 %v1278_v16  ;;  %v1313_v47 = vld [vmem:[#allocation5 + $0x110] sm:$0xff]   ;;  %v1314_v48 = vld [vmem:[#allocation5 + $0x158] sm:$0xff]   ;;  %v1321_v53 = vld [vmem:[#allocation2 + $0x70] ss:$28 sps:$4 sm:$0xff]  }
  0x38   :  { %1145 = vmatprep.subr.bf16.mxu1 %v1279_v17  ;;  %v1315_v49 = vld [vmem:[#allocation5 + $0x190] sm:$0xff]   ;;  %v1316_v50 = vld [vmem:[#allocation5 + $0x118] sm:$0xff]   ;;  %v1323_v55 = vld [vmem:[#allocation5 + $0x160] sm:$0xff]  }
  0x39   :  { %v1317_v51 = vld [vmem:[#allocation2 + $0x74] ss:$28 sps:$4 sm:$0xff]   ;;  %v1319_v52 = vld [vmem:[#allocation2 + $0x7c] ss:$28 sps:$4 sm:$0xff]   ;;  %v1325_v57 = vld [vmem:[#allocation5 + $0x120] sm:$0xff]  }
  0x3a   :  { %1106 = vmatpush3.bf16.msra.mxu0 %v1280_v18  ;;  %v1322_v54 = vld [vmem:[#allocation2 + $0x78] ss:$28 sps:$4 sm:$0xff]   ;;  %v1324_v56 = vld [vmem:[#allocation5 + $0x198] sm:$0xff]   ;;  %v1326_v58 = vld [vmem:[#allocation5 + $0x168] sm:$0xff]  }
  0x3b   :  { %1146 = vmatpush3.bf16.msra.mxu1 %v1281_v19  ;;  %1107 = vmatprep.subr.bf16.mxu0 %v1282_v20  ;;  %v1327_v59 = vld [vmem:[#allocation5 + $0x1a0] sm:$0xff]   ;;  %v1328_v60 = vld [vmem:[#allocation5 + $0x128] sm:$0xff]   ;;  %v1333_v3 = vld [vmem:[#allocation5 + $0x170] sm:$0xff]  }
  0x3c   :  { %1147 = vmatprep.subr.bf16.mxu1 %v1283_v21  ;;  %v71_v61 = vld [vmem:[#allocation2 + $0xa8] sm:$0x11]  ;;  %v72_v62 = vld [vmem:[#allocation2 + $0xb0] sm:$0x11]  ;;  %v1336_v6 = vld [vmem:[#allocation5 + $0x178] sm:$0xff]  }
  0x3d   :  { %v1035_v63 = vcombine.high %v71_v61, %v71_v61  ;;  %v1037_v0 = vcombine.high %v72_v62, %v72_v62  ;;  %v1034_v1 = vcombine.low %v71_v61, %v71_v61  ;;  %v1036_v2 = vcombine.low %v72_v62, %v72_v62  ;;  %v1334_v4 = vld [vmem:[#allocation5 + $0x1a8] sm:$0xff]   ;;  %v1335_v5 = vld [vmem:[#allocation5 + $0x130] sm:$0xff]   ;;  %v1338_v8 = vld [vmem:[#allocation5 + $0x138] sm:$0xff]  }
  0x3e   :  { %1108 = vmatpush3.bf16.msra.mxu0 %v1284_v22  ;;  %v1337_v7 = vld [vmem:[#allocation5 + $0x1b0] sm:$0xff]   ;;  %v1339_v9 = vld [vmem:[#allocation2 + $0x10] ss:$28 sps:$4 sm:$0xff]   ;;  %v1342_v11 = vld [vmem:[#allocation5 + $0x1b8] sm:$0xff]  }
  0x3f   :  { %1148 = vmatpush3.bf16.msra.mxu1 %v1285_v23  ;;  %1109 = vmatprep.subr.bf16.mxu0 %v1286_v24  ;;  %v1341_v10 = vld [vmem:[#allocation2 + $0x14] ss:$28 sps:$4 sm:$0xff]   ;;  %v1345_v13 = vld [vmem:[#allocation2 + $0x4c] ss:$28 sps:$4 sm:$0xff]   ;;  %v1348_v17 = vld [vmem:[#allocation2 + $0x84] ss:$28 sps:$4 sm:$0xff]  }
  0x40   :  { %1149 = vmatprep.subr.bf16.mxu1 %v1287_v25  ;;  %v1343_v12 = vld [vmem:[#allocation2 + $0x18] ss:$28 sps:$4 sm:$0xff]   ;;  %v1344_v14 = vld [vmem:[#allocation2 + $0x50] ss:$28 sps:$4 sm:$0xff]   ;;  %v1351_v15 = vld [vmem:[#allocation2 + $0x88] ss:$28 sps:$4 sm:$0xff]  }
  0x41   :  { %v1347_v16 = vld [vmem:[#allocation2 + $0x48] ss:$28 sps:$4 sm:$0xff]   ;;  %v1352_v18 = vld [vmem:[#allocation2 + $0xc0] ss:$0 sps:$4 sm:$0x11]  }
  0x42   :  { %1110 = vmatpush3.bf16.msra.mxu0 %v1288_v26  ;;  %v73_v19 = vld [vmem:[#allocation2 + $0xb8] sm:$0x11] }
  0x43   :  { %1150 = vmatpush3.bf16.msra.mxu1 %v1289_v27  ;;  %1111 = vmatprep.subr.bf16.mxu0 %v1290_v28  ;;  %v1350_v20 = vld [vmem:[#allocation2 + $0x80] ss:$28 sps:$4 sm:$0xff]   ;;  %v1039_v21 = vcombine.high %v73_v19, %v73_v19  ;;  %v1038_v22 = vcombine.low %v73_v19, %v73_v19 }
  0x44   :  { %1151 = vmatprep.subr.bf16.mxu1 %v1291_v29 }
  0x46   :  { %1112 = vmatpush3.bf16.msra.mxu0 %v1292_v30 }
  0x47   :  { %1152 = vmatpush3.bf16.msra.mxu1 %v1293_v31  ;;  %1177 = vmatprep.subr.bf16.mxu0 %v1300_v36 }
  0x48   :  { %1229 = vmatprep.subr.bf16.mxu1 %v1303_v39 }
  0x49   :  { %689 = vmatmul.mubr.bf16.vlgmr.msra.gmra.mrb[0].mxu0 %v1294_v32 }
  0x4a   :  { %753 = vmatmul.mubr.bf16.vlgmr.msra.gmra.mrb[0].mxu1 %v1297_v34  ;;  %1178 = vmatpush3.bf16.msra.mxu0 %v1301_v37 }
  0x4b   :  { %1179 = vmatprep.subr.bf16.mxu0 %v1302_v38  ;;  %1230 = vmatpush3.bf16.msra.mxu1 %v1303_v39 }
  0x4c   :  { %696 = vmatprep.mubr.bf16.mxu0 %v1305_v41  ;;  %760 = vmatprep.mubr.bf16.mxu1 %v1307_v42 }
  0x4d   :  { %1231 = vmatprep.subr.bf16.mxu1 %v1312_v46 }
  0x4e   :  { %1180 = vmatpush3.bf16.msra.mxu0 %v1304_v40 }
  0x4f   :  { %1181 = vmatprep.subr.bf16.mxu0 %v1311_v45  ;;  %1232 = vmatpush3.bf16.msra.mxu1 %v1312_v46 }
  0x50   :  { %1233 = vmatprep.subr.bf16.mxu1 %v1315_v49 }
  0x51   :  { %697 = vmatmul.mubr.bf16.gmra.mrb[4].mxu0 %v1309_v43 }
  0x52   :  { %761 = vmatmul.mubr.bf16.gmra.mrb[4].mxu1 %v1310_v44  ;;  %1182 = vmatpush3.bf16.msra.mxu0 %v1313_v47 }
  0x53   :  { %1183 = vmatprep.subr.bf16.mxu0 %v1314_v48  ;;  %1234 = vmatpush3.bf16.msra.mxu1 %v1315_v49 }
  0x54   :  { %704 = vmatprep.mubr.bf16.mxu0 %v1317_v51  ;;  %768 = vmatprep.mubr.bf16.mxu1 %v1319_v52 }
  0x55   :  { %1235 = vmatprep.subr.bf16.mxu1 %v1324_v56 }
  0x56   :  { %1184 = vmatpush3.bf16.msra.mxu0 %v1316_v50 }
  0x57   :  { %1185 = vmatprep.subr.bf16.mxu0 %v1323_v55  ;;  %1236 = vmatpush3.bf16.msra.mxu1 %v1324_v56 }
  0x58   :  { %1237 = vmatprep.subr.bf16.mxu1 %v1327_v59 }
  0x59   :  { %705 = vmatmul.mubr.bf16.gmra.mrb[8].mxu0 %v1321_v53 }
  0x5a   :  { %769 = vmatmul.mubr.bf16.gmra.mrb[8].mxu1 %v1322_v54  ;;  %1186 = vmatpush3.bf16.msra.mxu0 %v1325_v57 }
  0x5b   :  { %1187 = vmatprep.subr.bf16.mxu0 %v1326_v58  ;;  %1238 = vmatpush3.bf16.msra.mxu1 %v1327_v59 }
  0x5c   :  { %712 = vmatprep.mubr.bf16.mxu0 %v1035_v63  ;;  %776 = vmatprep.mubr.bf16.mxu1 %v1037_v0 }
  0x5d   :  { %1239 = vmatprep.subr.bf16.mxu1 %v1334_v4 }
  0x5e   :  { %1188 = vmatpush3.bf16.msra.mxu0 %v1328_v60 }
  0x5f   :  { %1189 = vmatprep.subr.bf16.mxu0 %v1333_v3  ;;  %1240 = vmatpush3.bf16.msra.mxu1 %v1334_v4 }
  0x60   :  { %1241 = vmatprep.subr.bf16.mxu1 %v1337_v7 }
  0x61   :  { %713 = vmatmul.mubr.bf16.gmra.mrb[12].mxu0 %v1034_v1 }
  0x62   :  { %777 = vmatmul.mubr.bf16.gmra.mrb[12].mxu1 %v1036_v2  ;;  %1190 = vmatpush3.bf16.msra.mxu0 %v1335_v5 }
  0x63   :  { %1191 = vmatprep.subr.bf16.mxu0 %v1336_v6  ;;  %816 = vmatprep.mubr.bf16.mxu0 %v1341_v10 }
  0x64   :  { %1242 = vmatpush3.bf16.msra.mxu1 %v1337_v7  ;;  %1245 = vmatprep.mubr.bf16.mxu1 %v1343_v12 }
  0x65   :  { %1243 = vmatprep.subr.bf16.mxu1 %v1342_v11 }
  0x66   :  { %1192 = vmatpush3.bf16.msra.mxu0 %v1338_v8 }
  0x68   :  { %1244 = vmatpush3.bf16.msra.mxu1 %v1342_v11 }
  0x69   :  { %817 = vmatmul.mubr.bf16.vlgmr.msra.gmra.mrb[16].mxu0 %v1339_v9 }
  0x6a   :  { %824 = vmatprep.mubr.bf16.mxu0 %v1345_v13 }
  0x6b   :  { %1246 = vmatmul.mubr.bf16.vlgmr.msra.gmra.mrb[16].mxu1 %v1344_v14 }
  0x6c   :  { %1249 = vmatprep.mubr.bf16.mxu1 %v1351_v15 }
  0x71   :  { %825 = vmatmul.mubr.bf16.gmra.mrb[20].mxu0 %v1347_v16 }
  0x72   :  { %832 = vmatprep.mubr.bf16.mxu0 %v1348_v17 }
  0x73   :  { %1250 = vmatmul.mubr.bf16.gmra.mrb[20].mxu1 %v1352_v18 }
  0x79   :  { %833 = vmatmul.mubr.bf16.gmra.mrb[24].mxu0 %v1350_v20 }
  0x7a   :  { %840 = vmatprep.mubr.bf16.mxu0 %v1039_v21 }
  0x81   :  { %841 = vmatmul.mubr.bf16.gmra.mrb[28].mxu0 %v1038_v22 }
 0x11c   :  { %v1113_v23 = vpop.f32.mrb[0].mxu0 }
 0x11d   :  { %v1153_v24 = vpop.f32.mrb[0].mxu1  ;;  %v1114_v25 = vpop.f32.mrb[1].mxu0 }
 0x11e   :  { %v1115_v26 = vadd.f32 %v1114_v25, %v1113_v23  ;;  %v1154_v27 = vpop.f32.mrb[1].mxu1  ;;  %v1116_v28 = vpop.f32.mrb[2].mxu0 }
 0x11f   :  { %v1155_v29 = vadd.f32 %v1154_v27, %v1153_v24  ;;  %v1156_v30 = vpop.f32.mrb[2].mxu1  ;;  %v1117_v31 = vpop.f32.mrb[3].mxu0 }
 0x120   :  { %v1118_v32 = vadd.f32 %v1117_v31, %v1116_v28  ;;  %v1157_v33 = vpop.f32.mrb[3].mxu1 }
 0x121   :  { %v755_v34 = vadd.f32 %v1155_v29, %v1115_v26  ;;  %v1158_v35 = vadd.f32 %v1157_v33, %v1156_v30 }
 0x123   :  { %v758_v36 = vadd.f32 %v1158_v35, %v1118_v32 }
 0x124   :  { %v1119_v37 = vpop.f32.mrb[4].mxu0 }
 0x125   :  { %v1159_v38 = vpop.f32.mrb[4].mxu1  ;;  %v1120_v39 = vpop.f32.mrb[5].mxu0 }
 0x126   :  { %v1121_v40 = vadd.f32 %v1120_v39, %v1119_v37  ;;  %v1160_v41 = vpop.f32.mrb[5].mxu1  ;;  %v1122_v42 = vpop.f32.mrb[6].mxu0 }
 0x127   :  { %v1161_v43 = vadd.f32 %v1160_v41, %v1159_v38  ;;  %v1162_v44 = vpop.f32.mrb[6].mxu1  ;;  %v1123_v45 = vpop.f32.mrb[7].mxu0 }
 0x128   :  { %v1124_v46 = vadd.f32 %v1123_v45, %v1122_v42  ;;  %v1163_v47 = vpop.f32.mrb[7].mxu1 }
 0x129   :  { %v763_v48 = vadd.f32 %v1161_v43, %v1121_v40  ;;  %v1164_v49 = vadd.f32 %v1163_v47, %v1162_v44 }
 0x12b   :  { %v766_v50 = vadd.f32 %v1164_v49, %v1124_v46 }
 0x12c   :  { %v1125_v51 = vpop.f32.mrb[8].mxu0 }
 0x12d   :  { %v1165_v52 = vpop.f32.mrb[8].mxu1  ;;  %v1126_v53 = vpop.f32.mrb[9].mxu0 }
 0x12e   :  { %v1166_v54 = vpop.f32.mrb[9].mxu1  ;;  %v1127_v55 = vadd.f32 %v1126_v53, %v1125_v51  ;;  %v1128_v57 = vpop.f32.mrb[10].mxu0 }
 0x12f   :  { %v1167_v56 = vadd.f32 %v1166_v54, %v1165_v52  ;;  %v1168_v58 = vpop.f32.mrb[10].mxu1  ;;  %v1129_v59 = vpop.f32.mrb[11].mxu0 }
 0x130   :  { %v1169_v60 = vpop.f32.mrb[11].mxu1  ;;  %v1130_v62 = vadd.f32 %v1129_v59, %v1128_v57 }
 0x131   :  { %v771_v61 = vadd.f32 %v1167_v56, %v1127_v55  ;;  %v1170_v63 = vadd.f32 %v1169_v60, %v1168_v58 }
 0x133   :  { %v774_v0 = vadd.f32 %v1170_v63, %v1130_v62 }
 0x134   :  { %v1131_v1 = vpop.f32.mrb[12].mxu0 }
 0x135   :  { %v1171_v2 = vpop.f32.mrb[12].mxu1  ;;  %v1132_v3 = vpop.f32.mrb[13].mxu0 }
 0x136   :  { %v1172_v4 = vpop.f32.mrb[13].mxu1  ;;  %v1133_v5 = vadd.f32 %v1132_v3, %v1131_v1  ;;  %v1134_v7 = vpop.f32.mrb[14].mxu0 }
 0x137   :  { %v1173_v6 = vadd.f32 %v1172_v4, %v1171_v2  ;;  %v1174_v8 = vpop.f32.mrb[14].mxu1  ;;  %v1135_v9 = vpop.f32.mrb[15].mxu0 }
 0x138   :  { %v1175_v10 = vpop.f32.mrb[15].mxu1 }
 0x139   :  { %v779_v11 = vadd.f32 %v1173_v6, %v1133_v5 }
 0x13c   :  { %v1193_v12 = vpop.f32.mrb[16].mxu0 }
 0x13d   :  { %v1194_v13 = vpop.f32.mrb[17].mxu0 }
 0x13e   :  { %v1195_v14 = vadd.f32 %v1194_v13, %v1193_v12  ;;  %v1196_v15 = vpop.f32.mrb[18].mxu0  ;;  %v1247_v18 = vpop.f32.mrb[16].mxu1 }
 0x13f   :  { %v1197_v16 = vpop.f32.mrb[19].mxu0  ;;  %v882_v20 = vpop.f32.mrb[17].mxu1 }
 0x140   :  { %v1198_v17 = vadd.f32 %v1197_v16, %v1196_v15  ;;  %v819_v19 = vadd.f32 %v1195_v14, %v755_v34  ;;  %v1248_v22 = vpop.f32.mrb[18].mxu1 }
 0x141   :  { %v885_v24 = vpop.f32.mrb[19].mxu1 }
 0x142   :  { %v1487_v21 = vadd.f32 %v882_v20, %v819_v19  ;;  %v822_v23 = vadd.f32 %v1198_v17, %v758_v36 }
 0x144   :  { %v1489_v25 = vadd.f32 %v885_v24, %v822_v23  ;;  %v1199_v26 = vpop.f32.mrb[20].mxu0  ;;  %v927_v28 = vmul.f32 %v1487_v21, %v1487_v21 }
 0x145   :  { %v1200_v27 = vpop.f32.mrb[21].mxu0 }
 0x146   :  { %v912_v29 = vadd.f32 %v1489_v25, %v1487_v21  ;;  %v928_v30 = vmul.f32 %v1489_v25, %v1489_v25  ;;  %v1201_v31 = vadd.f32 %v1200_v27, %v1199_v26  ;;  %v1202_v32 = vpop.f32.mrb[22].mxu0  ;;  %v1251_v37 = vpop.f32.mrb[20].mxu1 }
 0x147   :  { %v1203_v33 = vpop.f32.mrb[23].mxu0  ;;  %v898_v38 = vpop.f32.mrb[21].mxu1 }
 0x148   :  { %v934_v34 = vadd.f32 %v928_v30, %v927_v28  ;;  %v827_v35 = vadd.f32 %v1201_v31, %v763_v48  ;;  %v1204_v36 = vadd.f32 %v1203_v33, %v1202_v32  ;;  %v1252_v41 = vpop.f32.mrb[22].mxu1  ;;  %v957_v33 = vlaneseq }
 0x149   :  { %v901_v42 = vpop.f32.mrb[23].mxu1 }
 0x14a   :  { %v1497_v39 = vadd.f32 %v1247_v18, %v827_v35  ;;  %v830_v40 = vadd.f32 %v1204_v36, %v766_v50  ;;  %v952_v35 = vld [vmem:[%s1531_s2] sm:$0x1]  ;;  %s1435_s2 = smov [#allocation7]  }
 0x14b   :  { %s1000_s19 = sshll.u32 %s1435_s2, 4  ;;  %s1001_s19 = int_to_ptr.vmem [resolvable:$true] %s1000_s19 }
 0x14c   :  { %v929_v43 = vmul.f32 %v1497_v39, %v1497_v39  ;;  %v1501_v44 = vadd.f32 %v1248_v22, %v830_v40  ;;  %v1205_v45 = vpop.f32.mrb[24].mxu0  ;;  %v913_v46 = vadd.f32 %v912_v29, %v1497_v39  ;;  %v954_v40 = vld [vmem:[%s1532_s3] sm:$0x1]  ;;  %s1401_s3 = scalar_lea.vmem %s1001_s19, 896  ;;  %p1406_p3 = scmp.lt.s32.totalorder %s1001_s19, %s1001_s19 }
 0x14d   :  { %v1206_v47 = vpop.f32.mrb[25].mxu0  ;;  %p1402_p2 = scmp.ne.s32.totalorder %s1001_s19, %s1401_s3  ;;  %p1407_p4 = scmp.lt.s32.totalorder %s1401_s3, %s1401_s3 }
 0x14e   :  { %v930_v48 = vmul.f32 %v1501_v44, %v1501_v44  ;;  %v1207_v49 = vadd.f32 %v1206_v47, %v1205_v45  ;;  %v1208_v51 = vpop.f32.mrb[26].mxu0  ;;  %v914_v52 = vadd.f32 %v913_v46, %v1501_v44  ;;  %v935_v53 = vadd.f32 %v934_v34, %v929_v43 }
 0x14f   :  { %v1209_v50 = vpop.f32.mrb[27].mxu0  ;;  %v958_v34 = vshrl.u32 %v957_v33, 7  ;;  %p1408_p5 = por %p1407_p4, %p1406_p3 }
 0x150   :  { %v1210_v54 = vadd.f32 %v1209_v50, %v1208_v51  ;;  %v835_v55 = vadd.f32 %v1207_v49, %v771_v61  ;;  %v936_v56 = vadd.f32 %v935_v53, %v930_v48 }
 0x151   :  { %v959_v36 = vsub.s32 0, %v958_v34  ;;  %p1409_p6 = pnand %p1408_p5, %p1402_p2 }
 0x152   :  { %v899_v57 = vadd.f32 %v898_v38, %v835_v55  ;;  %v838_v58 = vadd.f32 %v1210_v54, %v774_v0 }
 0x154   :  { %v915_v59 = vadd.f32 %v914_v52, %v899_v57  ;;  %v931_v60 = vmul.f32 %v899_v57, %v899_v57  ;;  %v902_v62 = vadd.f32 %v901_v42, %v838_v58  ;;  %v1211_v63 = vpop.f32.mrb[28].mxu0 }
 0x155   :  { %v1212_v1 = vpop.f32.mrb[29].mxu0 }
 0x156   :  { %v937_v2 = vadd.f32 %v936_v56, %v931_v60  ;;  %v916_v3 = vadd.f32 %v915_v59, %v902_v62  ;;  %v932_v4 = vmul.f32 %v902_v62, %v902_v62  ;;  %v1213_v5 = vadd.f32 %v1212_v1, %v1211_v63  ;;  %v1214_v6 = vpop.f32.mrb[30].mxu0 }
 0x157   :  { %v1215_v7 = vpop.f32.mrb[31].mxu0 }
 0x158   :  { %v938_v8 = vadd.f32 %v937_v2, %v932_v4  ;;  %v843_v9 = vadd.f32 %v1213_v5, %v779_v11 }
 0x15a   :  { %v907_v10 = vadd.f32 %v1251_v37, %v843_v9 }
 0x15c   :  { %v918_v12 = vsel %vm917_vm0, %v907_v10, 0.0  ;;  %v933_v61 = vmul.f32 %v907_v10, %v907_v10 }
 0x15d   :  { %v919_v13 = vadd.f32 %v918_v12, %v916_v3 }
 0x15e   :  { %v939_v14 = vsel %vm917_vm0, %v933_v61, 0.0 }
 0x15f   :  { %v920_v0 = vrot.slane %v919_v13, 4  ;;  %v940_v15 = vadd.f32 %v939_v14, %v938_v8 }
 0x161   :  { %v921_v16 = vadd.f32 %v920_v0, %v919_v13  ;;  %v941_v17 = vrot.slane %v940_v15, 4 }
 0x163   :  { %v922_v18 = vrot.slane %v921_v16, 2  ;;  %v942_v19 = vadd.f32 %v941_v17, %v940_v15 }
 0x165   :  { %v923_v20 = vadd.f32 %v922_v18, %v921_v16  ;;  %v943_v22 = vrot.slane %v942_v19, 2 }
 0x167   :  { %v924_v23 = vrot.slane %v923_v20, 1  ;;  %v944_v24 = vadd.f32 %v943_v22, %v942_v19 }
 0x169   :  { %v925_v26 = vadd.f32 %v924_v23, %v923_v20  ;;  %v945_v27 = vrot.slane %v944_v24, 1 }
 0x16b   :  { %v926_v28 = vmul.f32 0.020408163, %v925_v26  ;;  %v946_v11 = vadd.f32 %v945_v27, %v944_v24 }
 0x16d   :  { %v947_v29 = vmul.f32 0.020408163, %v946_v11  ;;  %v948_v30 = vmul.f32 %v926_v28, %v926_v28 }
 0x16f   :  { %v949_v31 = vsub.f32 %v947_v29, %v948_v30 }
 0x171   :  { %v950_v32 = vadd.f32 1e-05, %v949_v31 }
 0x173   :  { %1355 = vrsqrt.f32 %v950_v32 }
 0x17d   :  { %v1356_v37 = vpop.eup %1355 }
 0x17e   :  { %v953_v38 = vmul.f32 %v1356_v37, %v952_v35 }
 0x180   :  { %v955_v41 = vmul.f32 %v953_v38, %v926_v28  ;;  %v960_v42 = vrot.slane %v953_v38, %v959_v36 }
 0x182   :  { %v956_v43 = vsub.f32 %v954_v40, %v955_v41  ;;  %v967_v45 = vmul.f32 %v960_v42, %v907_v10  ;;  %v961_v46 = vmul.f32 %v960_v42, %v1487_v21  ;;  %v962_v47 = vmul.f32 %v960_v42, %v1489_v25 }
 0x183   :  { %v963_v48 = vmul.f32 %v960_v42, %v1497_v39  ;;  %v964_v49 = vmul.f32 %v960_v42, %v1501_v44  ;;  %v965_v51 = vmul.f32 %v960_v42, %v899_v57  ;;  %v966_v52 = vmul.f32 %v960_v42, %v902_v62 }
 0x184   :  { %v972_v53 = vrot.slane %v956_v43, %v959_v36 }
 0x186   :  { %v980_v50 = vadd.f32 %v972_v53, %v967_v45  ;;  %v974_v54 = vadd.f32 %v972_v53, %v961_v46  ;;  %v975_v55 = vadd.f32 %v972_v53, %v962_v47  ;;  %v976_v56 = vadd.f32 %v972_v53, %v963_v48 }
 0x187   :  { %v977_v58 = vadd.f32 %v972_v53, %v964_v49  ;;  %v978_v59 = vadd.f32 %v972_v53, %v965_v51  ;;  %v979_v60 = vadd.f32 %v972_v53, %v966_v52 }
 0x188   :  { %v987_v63 = vmax.f32 %v980_v50, 0.0  ;;  %v981_v21 = vmax.f32 %v974_v54, 0.0  ;;  %v982_v1 = vmax.f32 %v975_v55, 0.0  ;;  %v983_v25 = vmax.f32 %v976_v56, 0.0 }
 0x189   :  { %v984_v39 = vmax.f32 %v977_v58, 0.0  ;;  %v985_v2 = vmax.f32 %v978_v59, 0.0  ;;  %v986_v44 = vmax.f32 %v979_v60, 0.0 }
 0x18a   :  { %994 = vst [vmem:[#allocation7 + $0x30] sm:$0x1] %v987_v63  ;;  %988 = vst [vmem:[#allocation7] sm:$0xff] %v981_v21 }
 0x18b   :  { %989 = vst [vmem:[#allocation7 + $0x8] sm:$0xff] %v982_v1  ;;  %990 = vst [vmem:[#allocation7 + $0x10] sm:$0xff] %v983_v25 }
 0x18c   :  { %991 = vst [vmem:[#allocation7 + $0x18] sm:$0xff] %v984_v39  ;;  %992 = vst [vmem:[#allocation7 + $0x20] sm:$0xff] %v985_v2 }
 0x18d   :  { %993 = vst [vmem:[#allocation7 + $0x28] sm:$0xff] %v986_v44 }
 0x18e   :  { %1412 = shalt.err (!%p1409_p6)
}
 0x18f   :  { %s1413_s22 = scalar_lea.hbm %s1533_s4, 896 }
 0x190   :  { %p1414_p7 = scmp.ne.s32.totalorder %s1533_s4, %s1413_s22  ;;  %p1417_p8 = scmp.lt.u32.totalorder %s1413_s22, %s1533_s4 }
 0x192   :  { %p1419_p9 = pnand %p1417_p8, %p1414_p7 }
 0x194   :  { %1422 = shalt.err (!%p1419_p9)
}
 0x195   :  { %s1436_s27 = smov 128   ;;  %s1437_s28 = smov 8  }
 0x196   :  { %1006 = dma.vmem_to_hbm [thread:$0]  %s1001_s19, 896, %s1533_s4, [#allocation4], %s1436_s27, %s1436_s27, %s1437_s28  }
 0x197   :  { %1427 = dma.done.wait [#allocation4], 896  }
 0x198   :  { %1428 = vsyncadd [#allocation4], 4294966400 }
 0x199   :  { %1010 = vsyncpa [#allocation3], 1 }
 0x19a   :  { %1011 = vsyncpa [#allocation6], 1 }
 0x19b   :  { %1012 = vsyncpa [#allocation4], 1 }

</bundles_post_ra>
